<compile_context>
chip_gen: v6e
topology: v6e:2x2x1
jax: 0.10.0
libtpu: 0.0.40
codegen_flags: <defaults>
</compile_context>

<pallas_src>
import functools

import jax
import jax.numpy as jnp
from jax import lax
from jax.experimental import pallas as pl
from jax.experimental.pallas import tpu as pltpu


# ----------------------------------------------------------------------------
# Tiling helpers
# ----------------------------------------------------------------------------

def _round_up(x, m):
    return ((x + m - 1) // m) * m


def _sublane_multiple(*dtypes):
    # f32/i32 -> 8, bf16 -> 16, int8 -> 32 sublane granularity.
    m = 8
    for dt in dtypes:
        m = max(m, 32 // jnp.dtype(dt).itemsize)
    return m


def _pick_row_tile(a_pad, sub_m):
    cands = [c for c in (256, 128, 64, 32, 16, 8) if c % sub_m == 0 and c <= a_pad]
    # Prefer >= 2 row blocks so both v7x TensorCores get work on the 'parallel'
    # axis; otherwise take the largest legal divisor.
    for c in cands:
        if a_pad % c == 0 and a_pad // c >= 2:
            return c
    for c in cands:
        if a_pad % c == 0:
            return c
    return a_pad


def _pick_col_tile(n, col_block=1024):
    col_block = max(int(col_block), 128)
    if n <= col_block:
        return n, n                     # full-extent block is always legal
    n_pad = n if n % 128 == 0 else _round_up(n, 128)
    for c in (1024, 512, 256, 128):
        if c <= col_block and n_pad % c == 0:
            return c, n_pad
    return 128, n_pad


def _vmem_limit_bytes():
    limit = 48 * 1024 * 1024            # safe everywhere (v7x has 64 MiB/TC)
    try:
        cap = pltpu.get_tpu_info().vmem_capacity_bytes
        limit = int(min(96 * 1024 * 1024, (3 * cap) // 4))
    except Exception:
        pass
    return limit


# ----------------------------------------------------------------------------
# Kernel
# ----------------------------------------------------------------------------

def _logits_tile(anchor_ref, contrast_ref, j, *, tn, inv_temp, contrast_resident):
    if contrast_resident:
        c = contrast_ref[pl.ds(pl.multiple_of(j * tn, tn), tn), :]
    else:
        c = contrast_ref[...]
    # Contract the feature dim of both [rows, D] operands on the MXU (no .T
    # relayout); f32 accumulation; 1/temperature fused into the epilogue.
    return lax.dot_general(
        anchor_ref[...], c,
        dimension_numbers=(((1,), (1,)), ((), ())),
        preferred_element_type=jnp.float32) * inv_temp


def _online_update(x, pmask, pcnt_ref, out_ref, m_sc, z_sc, s_sc, *,
                   n_real, has_col_pad, scale):
    """Flash-style online update for one (tm x tn) logits tile."""
    tm, tn = x.shape
    i = pl.program_id(0)
    j = pl.program_id(1)
    n_j = pl.num_programs(1)

    @pl.when(j == 0)
    def _init():
        m_sc[...] = jnp.full_like(m_sc, -jnp.inf)
        z_sc[...] = jnp.zeros_like(z_sc)
        s_sc[...] = jnp.zeros_like(s_sc)

    m_prev = m_sc[...]
    m_new = jnp.maximum(m_prev, jnp.max(x, axis=1, keepdims=True))
    alpha = jnp.exp(m_prev - m_new)
    ex = jnp.exp(x - m_new)

    row_lo = i * tm
    col_lo = j * tn
    # Only tiles that can contain the self-contrast diagonal (or, when the
    # contrast axis is padded, the ragged last column tile) pay for the
    # iota/compare/select masking work; all other tiles take the fast path.
    needs_mask = (row_lo < col_lo + tn) & (col_lo < row_lo + tm)
    if has_col_pad:
        needs_mask = needs_mask | (j == n_j - 1)

    @pl.when(needs_mask)
    def _masked():
        row_g = row_lo + lax.broadcasted_iota(jnp.int32, (tm, tn), 0)
        col_g = col_lo + lax.broadcasted_iota(jnp.int32, (tm, tn), 1)
        keep = row_g != col_g
        if has_col_pad:
            keep = keep & (col_g < n_real)
        z_sc[...] = alpha * z_sc[...] + jnp.sum(
            jnp.where(keep, ex, 0.0), axis=1, keepdims=True)
        s_sc[...] = s_sc[...] + jnp.sum(
            jnp.where(keep, pmask, 0.0) * x, axis=1, keepdims=True)

    @pl.when(jnp.logical_not(needs_mask))
    def _fast():
        z_sc[...] = alpha * z_sc[...] + jnp.sum(ex, axis=1, keepdims=True)
        s_sc[...] = s_sc[...] + jnp.sum(pmask * x, axis=1, keepdims=True)

    m_sc[...] = m_new

    @pl.when(j == n_j - 1)
    def _finalize():
        # NOTE: anchors with zero positives yield 0/0 = NaN, exactly like the
        # reference PyTorch implementation (documented precondition).
        mlpp = s_sc[...] / pcnt_ref[...] - m_sc[...] - jnp.log(z_sc[...])
        out_ref[...] = (-scale * mlpp).astype(out_ref.dtype)


def _supcon_kernel_labels(anchor_ref, contrast_ref, rlab_ref, clab_ref, pcnt_ref,
                          out_ref, m_sc, z_sc, s_sc, *, inv_temp, scale, tn,
                          n_real, has_col_pad, contrast_resident):
    j = pl.program_id(1)
    x = _logits_tile(anchor_ref, contrast_ref, j, tn=tn, inv_temp=inv_temp,
                     contrast_resident=contrast_resident)
    # positives mask rebuilt on the fly from two tiny label vectors
    pmask = (rlab_ref[...] == clab_ref[...]).astype(jnp.float32)
    _online_update(x, pmask, pcnt_ref, out_ref, m_sc, z_sc, s_sc,
                   n_real=n_real, has_col_pad=has_col_pad, scale=scale)


def _supcon_kernel_dense(anchor_ref, contrast_ref, pmask_ref, pcnt_ref,
                         out_ref, m_sc, z_sc, s_sc, *, inv_temp, scale, tn,
                         n_real, has_col_pad, contrast_resident):
    j = pl.program_id(1)
    x = _logits_tile(anchor_ref, contrast_ref, j, tn=tn, inv_temp=inv_temp,
                     contrast_resident=contrast_resident)
    pmask = pmask_ref[...].astype(jnp.float32)
    _online_update(x, pmask, pcnt_ref, out_ref, m_sc, z_sc, s_sc,
                   n_real=n_real, has_col_pad=has_col_pad, scale=scale)


# ----------------------------------------------------------------------------
# Wrapper
# ----------------------------------------------------------------------------

def supcon_loss(features, labels=None, mask=None, *, temperature=0.07,
                contrast_mode="all", base_temperature=0.07,
                compute_dtype=jnp.float32, col_block=1024):
    """SupConLoss forward.  features: [bsz, n_views, ...] -> scalar f32."""
    features = jnp.asarray(features, jnp.float32)
    if features.ndim < 3:
        raise ValueError("`features` needs to be [bsz, n_views, ...]")
    if features.ndim > 3:
        features = features.reshape(features.shape[0], features.shape[1], -1)
    bsz, n_views, d = features.shape

    if labels is not None and mask is not None:
        raise ValueError("Cannot define both `labels` and `mask`")

    contrast_count = n_views
    # torch.cat(torch.unbind(features, dim=1), dim=0)  ==  view-major flattening
    contrast_feature = jnp.swapaxes(features, 0, 1).reshape(bsz * n_views, d)
    if contrast_mode == "one":
        anchor_feature = features[:, 0]
        anchor_count = 1
    elif contrast_mode == "all":
        anchor_feature = contrast_feature
        anchor_count = contrast_count
    else:
        raise ValueError(f"Unknown mode: {contrast_mode}")

    A = bsz * anchor_count          # anchor rows
    N = bsz * contrast_count        # contrast columns

    use_labels_path = mask is None
    if use_labels_path:
        if labels is None:
            lab = jnp.arange(bsz, dtype=jnp.int32)      # SimCLR: eye(bsz)
        else:
            lab = jnp.asarray(labels).reshape(-1).astype(jnp.int32)
            if lab.shape[0] != bsz:
                raise ValueError("Num of labels does not match num of features")
        same = lab[:, None] == lab[None, :]
        rowsum = jnp.sum(same, axis=1).astype(jnp.float32)      # includes self
        p_base = contrast_count * rowsum - 1.0                  # drop self pair
        rlab = lab if contrast_mode == "one" else jnp.tile(lab, anchor_count)
        clab = jnp.tile(lab, contrast_count)
        mask_dtypes = (jnp.int32,)
    else:
        base_mask = jnp.asarray(mask, jnp.float32)
        rowsum = jnp.sum(base_mask, axis=1)
        diag = jnp.diagonal(base_mask)
        p_base = contrast_count * rowsum - diag
        mask_dtypes = (jnp.int8,)

    p_anchor = p_base if contrast_mode == "one" else jnp.tile(p_base, anchor_count)

    # --- tiling / padding ---------------------------------------------------
    sub_m = _sublane_multiple(compute_dtype, *mask_dtypes)
    a_pad = _round_up(A, sub_m)
    tm = _pick_row_tile(a_pad, sub_m)
    tn, n_pad = _pick_col_tile(N, col_block)
    has_col_pad = n_pad != N
    grid = (a_pad // tm, n_pad // tn)

    anchor_p = jnp.pad(anchor_feature, ((0, a_pad - A), (0, 0))).astype(compute_dtype)
    contrast_p = jnp.pad(contrast_feature, ((0, n_pad - N), (0, 0))).astype(compute_dtype)
    pcnt = jnp.pad(p_anchor, (0, a_pad - A), constant_values=1.0)
    pcnt = pcnt.reshape(a_pad, 1).astype(jnp.float32)

    # Keep contrast features VMEM-resident across row tiles when small enough.
    itemsize = jnp.dtype(compute_dtype).itemsize
    contrast_resident = (2 * n_pad * d * itemsize) <= (8 << 20)
    if contrast_resident:
        contrast_spec = pl.BlockSpec((n_pad, d), lambda i, j: (0, 0))
    else:
        contrast_spec = pl.BlockSpec((tn, d), lambda i, j: (j, 0))

    anchor_spec = pl.BlockSpec((tm, d), lambda i, j: (i, 0))
    col_vec_spec = pl.BlockSpec((tm, 1), lambda i, j: (i, 0))
    out_spec = pl.BlockSpec((tm, 1), lambda i, j: (i, 0))
    out_shape = jax.ShapeDtypeStruct((a_pad, 1), jnp.float32)
    scratch = [pltpu.VMEM((tm, 1), jnp.float32)] * 3      # m, z, s

    common = dict(inv_temp=1.0 / temperature,
                  scale=temperature / base_temperature,
                  tn=tn, n_real=N, has_col_pad=has_col_pad,
                  contrast_resident=contrast_resident)
    compiler_params = pltpu.CompilerParams(
        dimension_semantics=("parallel", "arbitrary"),
        vmem_limit_bytes=_vmem_limit_bytes())

    if use_labels_path:
        rlab_p = jnp.pad(rlab, (0, a_pad - A)).reshape(a_pad, 1).astype(jnp.int32)
        clab_p = jnp.pad(clab, (0, n_pad - N), constant_values=-1)
        clab_p = clab_p.reshape(1, n_pad).astype(jnp.int32)
        per_anchor = pl.pallas_call(
            functools.partial(_supcon_kernel_labels, **common),
            out_shape=out_shape,
            grid=grid,
            in_specs=[
                anchor_spec,
                contrast_spec,
                pl.BlockSpec((tm, 1), lambda i, j: (i, 0)),   # anchor labels
                pl.BlockSpec((1, tn), lambda i, j: (0, j)),   # contrast labels
                col_vec_spec,                                 # P_i
            ],
            out_specs=out_spec,
            scratch_shapes=scratch,
            compiler_params=compiler_params,
        )(anchor_p, contrast_p, rlab_p, clab_p, pcnt)
    else:
        pos = jnp.tile(base_mask, (anchor_count, contrast_count))
        idx = jnp.arange(A)
        pos = pos.at[idx, idx].set(0.0)
        # TODO(synk): dense-mask path assumes a {0,1} mask (as documented in
        # the PyTorch module); it is streamed as int8 (4x less HBM than f32).
        pos = jnp.pad(pos, ((0, a_pad - A), (0, n_pad - N))).astype(jnp.int8)
        per_anchor = pl.pallas_call(
            functools.partial(_supcon_kernel_dense, **common),
            out_shape=out_shape,
            grid=grid,
            in_specs=[
                anchor_spec,
                contrast_spec,
                pl.BlockSpec((tm, tn), lambda i, j: (i, j)),  # dense positives
                col_vec_spec,                                 # P_i
            ],
            out_specs=out_spec,
            scratch_shapes=scratch,
            compiler_params=compiler_params,
        )(anchor_p, contrast_p, pos, pcnt)

    # loss.view(anchor_count, batch_size).mean() == mean over all real anchors
    return jnp.mean(per_anchor[:A, 0])


# ----------------------------------------------------------------------------
# Pure-JAX reference (transcription of the PyTorch forward) for checking
# ----------------------------------------------------------------------------

def supcon_loss_ref(features, labels=None, mask=None, *, temperature=0.07,
                    contrast_mode="all", base_temperature=0.07):
    features = jnp.asarray(features, jnp.float32)
    bsz, n_views = features.shape[0], features.shape[1]
    features = features.reshape(bsz, n_views, -1)
    if labels is None and mask is None:
        base_mask = jnp.eye(bsz, dtype=jnp.float32)
    elif labels is not None:
        labels = jnp.asarray(labels).reshape(-1, 1)
        base_mask = (labels == labels.T).astype(jnp.float32)
    else:
        base_mask = jnp.asarray(mask, jnp.float32)
    contrast_count = n_views
    contrast_feature = jnp.swapaxes(features, 0, 1).reshape(bsz * n_views, -1)
    if contrast_mode == "one":
        anchor_feature, anchor_count = features[:, 0], 1
    else:
        anchor_feature, anchor_count = contrast_feature, contrast_count
    logits = jnp.matmul(anchor_feature, contrast_feature.T) / temperature
    logits = logits - jnp.max(logits, axis=1, keepdims=True)
    m = jnp.tile(base_mask, (anchor_count, contrast_count))
    A, N = bsz * anchor_count, bsz * contrast_count
    logits_mask = 1.0 - jnp.eye(A, N, dtype=jnp.float32)
    m = m * logits_mask
    exp_logits = jnp.exp(logits) * logits_mask
    log_prob = logits - jnp.log(jnp.sum(exp_logits, axis=1, keepdims=True))
    mean_log_prob_pos = jnp.sum(m * log_prob, axis=1) / jnp.sum(m, axis=1)
    loss = -(temperature / base_temperature) * mean_log_prob_pos
    return jnp.mean(loss.reshape(anchor_count, bsz))


# ----------------------------------------------------------------------------
# Self-check
# ----------------------------------------------------------------------------

if __name__ == "__main__":
    key = jax.random.PRNGKey(0)
    k1, k2, k3, k4, k5 = jax.random.split(key, 5)

    bsz, n_views, d = 8, 2, 32
    feats = jax.random.normal(k1, (bsz, n_views, d), dtype=jnp.float32)
    feats = feats / jnp.linalg.norm(feats, axis=-1, keepdims=True)
    labels = jax.random.randint(k2, (bsz,), 0, 3)

    def _check(name, got, ref, atol, rtol):
        got = jax.block_until_ready(got)
        ref = jax.block_until_ready(ref)
        assert jnp.allclose(got, ref, atol=atol, rtol=rtol), (name, got, ref)

    # 1) unsupervised SimCLR path
    _check("simclr", supcon_loss(feats), supcon_loss_ref(feats), 1e-3, 1e-3)

    # 2) supervised labels, contrast_mode='all'
    ref_labels_all = supcon_loss_ref(feats, labels=labels)
    _check("labels-all", supcon_loss(feats, labels=labels), ref_labels_all,
           1e-3, 1e-3)

    # 3) supervised labels, contrast_mode='one'
    _check("labels-one",
           supcon_loss(feats, labels=labels, contrast_mode="one"),
           supcon_loss_ref(feats, labels=labels, contrast_mode="one"),
           1e-3, 1e-3)

    # 4) explicit dense-mask path (binary; every row keeps >= 1 positive)
    bern = (jax.random.uniform(k3, (bsz, bsz)) < 0.4).astype(jnp.float32)
    mask = jnp.maximum(bern, jnp.eye(bsz, dtype=jnp.float32))
    _check("mask", supcon_loss(feats, mask=mask),
           supcon_loss_ref(feats, mask=mask), 1e-3, 1e-3)

    # 5) bf16 feature path (halved feature DMA / 2x MXU rate); looser tolerance
    _check("bf16",
           supcon_loss(feats, labels=labels, compute_dtype=jnp.bfloat16),
           ref_labels_all, 5e-2, 5e-2)

    # 6) multi-tile path: several row/col tiles, ragged (padded) contrast axis,
    #    exercises the diag-gated fast/masked branches and online accumulation.
    bsz6 = 100
    feats6 = jax.random.normal(k4, (bsz6, n_views, d), dtype=jnp.float32)
    feats6 = feats6 / jnp.linalg.norm(feats6, axis=-1, keepdims=True)
    labels6 = jax.random.randint(k5, (bsz6,), 0, 3)
    _check("multi-tile",
           supcon_loss(feats6, labels=labels6, col_block=128),
           supcon_loss_ref(feats6, labels=labels6), 1e-3, 1e-3)

    print("KERNEL_OK")
</pallas_src>

<mosaic_0001>
module attributes {stable_mosaic.version = 11 : i64} {
  func.func @_supcon_kernel_labels(%arg0: i32, %arg1: i32, %arg2: memref<8x32xf32, #tpu.memory_space<vmem>>, %arg3: memref<16x32xf32, #tpu.memory_space<vmem>>, %arg4: memref<8x1xi32, #tpu.memory_space<vmem>>, %arg5: memref<1x16xi32, #tpu.memory_space<vmem>>, %arg6: memref<8x1xf32, #tpu.memory_space<vmem>>, %arg7: memref<8x1xf32, #tpu.memory_space<vmem>>, %arg8: memref<8x1xf32, #tpu.memory_space<vmem>>, %arg9: memref<8x1xf32, #tpu.memory_space<vmem>>, %arg10: memref<8x1xf32, #tpu.memory_space<vmem>>) attributes {dimension_semantics = [#tpu.dimension_semantics<parallel>, #tpu.dimension_semantics<arbitrary>], iteration_bounds = array<i64: 2, 1>, scalar_prefetch = 0 : i64, scratch_operands = 3 : i64, tpu.core_type = #tpu.core_type<tc>, window_params = [{transform_indices = @transform_0, window_bounds = array<i64: 8, 32>}, {pipeline_mode = #tpu.pipeline_mode<synchronous>, transform_indices = @transform_1, window_bounds = array<i64: 16, 32>}, {transform_indices = @transform_2, window_bounds = array<i64: 8, 1>}, {transform_indices = @transform_3, window_bounds = array<i64: 1, 16>}, {transform_indices = @transform_4, window_bounds = array<i64: 8, 1>}, {transform_indices = @transform_5, window_bounds = array<i64: 8, 1>}]} {
    %c16_i32 = arith.constant 16 : i32
    %0 = arith.muli %arg1, %c16_i32 : i32
    %1 = tpu.assume_multiple %0, 16 : i32
    %2 = arith.index_cast %1 : i32 to index
    %c0 = arith.constant 0 : index
    %3 = vector.load %arg3[%2, %c0] : memref<16x32xf32, #tpu.memory_space<vmem>>, vector<16x32xf32>
    %c0_0 = arith.constant 0 : index
    %c0_1 = arith.constant 0 : index
    %4 = vector.load %arg2[%c0_0, %c0_1] : memref<8x32xf32, #tpu.memory_space<vmem>>, vector<8x32xf32>
    %cst = arith.constant dense<0.000000e+00> : vector<8x16xf32>
    %5 = tpu.matmul %4, %3, %cst {dimension_numbers = #tpu.dot_dimension_numbers<[1], [1], [0], [0], [0, 0, 1, 0], [], []>} : vector<8x32xf32>, vector<16x32xf32>, vector<8x16xf32> -> vector<8x16xf32>
    %cst_2 = arith.constant 14.2857141 : f32
    %6 = vector.broadcast %cst_2 : f32 to vector<8x16xf32>
    %7 = arith.mulf %5, %6 : vector<8x16xf32>
    %c0_3 = arith.constant 0 : index
    %c0_4 = arith.constant 0 : index
    %8 = vector.load %arg4[%c0_3, %c0_4] : memref<8x1xi32, #tpu.memory_space<vmem>>, vector<8x1xi32>
    %c0_5 = arith.constant 0 : index
    %c0_6 = arith.constant 0 : index
    %9 = vector.load %arg5[%c0_5, %c0_6] : memref<1x16xi32, #tpu.memory_space<vmem>>, vector<1x16xi32>
    %10 = vector.broadcast %8 : vector<8x1xi32> to vector<8x16xi32>
    %11 = vector.broadcast %9 : vector<1x16xi32> to vector<8x16xi32>
    %12 = arith.cmpi eq, %10, %11 : vector<8x16xi32>
    %13 = arith.extui %12 : vector<8x16xi1> to vector<8x16xi32>
    %14 = arith.sitofp %13 : vector<8x16xi32> to vector<8x16xf32>
    %c0_i32 = arith.constant 0 : i32
    %15 = arith.cmpi eq, %arg1, %c0_i32 : i32
    %16 = arith.extui %15 : i1 to i32
    %c0_i32_7 = arith.constant 0 : i32
    %17 = arith.cmpi ne, %16, %c0_i32_7 : i32
    scf.if %17 {
      %cst_20 = arith.constant 0xFF800000 : f32
      %43 = vector.broadcast %cst_20 : f32 to vector<8x1xf32>
      %c0_21 = arith.constant 0 : index
      %c0_22 = arith.constant 0 : index
      %44 = vector.load %arg8[%c0_21, %c0_22] : memref<8x1xf32, #tpu.memory_space<vmem>>, vector<8x1xf32>
      tpu.vector_store %arg8[%c0_21, %c0_22], %43 {strides = array<i32>} : memref<8x1xf32, #tpu.memory_space<vmem>>, vector<8x1xf32>,
      %cst_23 = arith.constant 0.000000e+00 : f32
      %45 = vector.broadcast %cst_23 : f32 to vector<8x1xf32>
      %c0_24 = arith.constant 0 : index
      %c0_25 = arith.constant 0 : index
      %46 = vector.load %arg9[%c0_24, %c0_25] : memref<8x1xf32, #tpu.memory_space<vmem>>, vector<8x1xf32>
      tpu.vector_store %arg9[%c0_24, %c0_25], %45 {strides = array<i32>} : memref<8x1xf32, #tpu.memory_space<vmem>>, vector<8x1xf32>,
      %cst_26 = arith.constant 0.000000e+00 : f32
      %47 = vector.broadcast %cst_26 : f32 to vector<8x1xf32>
      %c0_27 = arith.constant 0 : index
      %c0_28 = arith.constant 0 : index
      %48 = vector.load %arg10[%c0_27, %c0_28] : memref<8x1xf32, #tpu.memory_space<vmem>>, vector<8x1xf32>
      tpu.vector_store %arg10[%c0_27, %c0_28], %47 {strides = array<i32>} : memref<8x1xf32, #tpu.memory_space<vmem>>, vector<8x1xf32>,
    } else {
    }
    %c0_8 = arith.constant 0 : index
    %c0_9 = arith.constant 0 : index
    %18 = vector.load %arg8[%c0_8, %c0_9] : memref<8x1xf32, #tpu.memory_space<vmem>>, vector<8x1xf32>
    %cst_10 = arith.constant dense<0xFF800000> : vector<8xf32>
    %19 = vector.multi_reduction <maximumf>, %7, %cst_10 [1] : vector<8x16xf32> to vector<8xf32>
    %20 = vector.shape_cast %19 : vector<8xf32> to vector<8x1xf32>
    %21 = arith.maximumf %18, %20 : vector<8x1xf32>
    %22 = arith.subf %18, %21 : vector<8x1xf32>
    %23 = math.exp %22 : vector<8x1xf32>
    %24 = vector.broadcast %21 : vector<8x1xf32> to vector<8x16xf32>
    %25 = arith.subf %7, %24 : vector<8x16xf32>
    %26 = math.exp %25 : vector<8x16xf32>
    %c8_i32 = arith.constant 8 : i32
    %27 = arith.muli %arg0, %c8_i32 : i32
    %c16_i32_11 = arith.constant 16 : i32
    %28 = arith.muli %arg1, %c16_i32_11 : i32
    %c16_i32_12 = arith.constant 16 : i32
    %29 = arith.addi %28, %c16_i32_12 : i32
    %30 = arith.cmpi slt, %27, %29 : i32
    %c8_i32_13 = arith.constant 8 : i32
    %31 = arith.addi %27, %c8_i32_13 : i32
    %32 = arith.cmpi slt, %28, %31 : i32
    %33 = arith.andi %30, %32 : i1
    %34 = arith.extui %33 : i1 to i32
    %c0_i32_14 = arith.constant 0 : i32
    %35 = arith.cmpi ne, %34, %c0_i32_14 : i32
    scf.if %35 {
      %43 = tpu.iota {dimensions = array<i32: 0>} : vector<8x16xi32>
      %44 = vector.broadcast %27 : i32 to vector<8x16xi32>
      %45 = arith.addi %44, %43 : vector<8x16xi32>
      %46 = tpu.iota {dimensions = array<i32: 1>} : vector<8x16xi32>
      %47 = vector.broadcast %28 : i32 to vector<8x16xi32>
      %48 = arith.addi %47, %46 : vector<8x16xi32>
      %49 = arith.cmpi ne, %45, %48 : vector<8x16xi32>
      %c0_20 = arith.constant 0 : index
      %c0_21 = arith.constant 0 : index
      %50 = vector.load %arg9[%c0_20, %c0_21] : memref<8x1xf32, #tpu.memory_space<vmem>>, vector<8x1xf32>
      %51 = arith.mulf %23, %50 : vector<8x1xf32>
      %cst_22 = arith.constant 0.000000e+00 : f32
      %52 = vector.broadcast %cst_22 : f32 to vector<8x16xf32>
      %53 = arith.select %49, %26, %52 : vector<8x16xi1>, vector<8x16xf32>
      %cst_23 = arith.constant dense<0.000000e+00> : vector<8xf32>
      %54 = vector.multi_reduction <add>, %53, %cst_23 [1] : vector<8x16xf32> to vector<8xf32>
      %55 = vector.shape_cast %54 : vector<8xf32> to vector<8x1xf32>
      %56 = arith.addf %51, %55 : vector<8x1xf32>
      %c0_24 = arith.constant 0 : index
      %c0_25 = arith.constant 0 : index
      %57 = vector.load %arg9[%c0_24, %c0_25] : memref<8x1xf32, #tpu.memory_space<vmem>>, vector<8x1xf32>
      tpu.vector_store %arg9[%c0_24, %c0_25], %56 {strides = array<i32>} : memref<8x1xf32, #tpu.memory_space<vmem>>, vector<8x1xf32>,
      %c0_26 = arith.constant 0 : index
      %c0_27 = arith.constant 0 : index
      %58 = vector.load %arg10[%c0_26, %c0_27] : memref<8x1xf32, #tpu.memory_space<vmem>>, vector<8x1xf32>
      %cst_28 = arith.constant 0.000000e+00 : f32
      %59 = vector.broadcast %cst_28 : f32 to vector<8x16xf32>
      %60 = arith.select %49, %14, %59 : vector<8x16xi1>, vector<8x16xf32>
      %61 = arith.mulf %60, %7 : vector<8x16xf32>
      %cst_29 = arith.constant dense<0.000000e+00> : vector<8xf32>
      %62 = vector.multi_reduction <add>, %61, %cst_29 [1] : vector<8x16xf32> to vector<8xf32>
      %63 = vector.shape_cast %62 : vector<8xf32> to vector<8x1xf32>
      %64 = arith.addf %58, %63 : vector<8x1xf32>
      %c0_30 = arith.constant 0 : index
      %c0_31 = arith.constant 0 : index
      %65 = vector.load %arg10[%c0_30, %c0_31] : memref<8x1xf32, #tpu.memory_space<vmem>>, vector<8x1xf32>
      tpu.vector_store %arg10[%c0_30, %c0_31], %64 {strides = array<i32>} : memref<8x1xf32, #tpu.memory_space<vmem>>, vector<8x1xf32>,
    } else {
    }
    %true = arith.constant true
    %36 = arith.xori %33, %true : i1
    %37 = arith.extui %36 : i1 to i32
    %c0_i32_15 = arith.constant 0 : i32
    %38 = arith.cmpi ne, %37, %c0_i32_15 : i32
    scf.if %38 {
      %c0_20 = arith.constant 0 : index
      %c0_21 = arith.constant 0 : index
      %43 = vector.load %arg9[%c0_20, %c0_21] : memref<8x1xf32, #tpu.memory_space<vmem>>, vector<8x1xf32>
      %44 = arith.mulf %23, %43 : vector<8x1xf32>
      %cst_22 = arith.constant dense<0.000000e+00> : vector<8xf32>
      %45 = vector.multi_reduction <add>, %26, %cst_22 [1] : vector<8x16xf32> to vector<8xf32>
      %46 = vector.shape_cast %45 : vector<8xf32> to vector<8x1xf32>
      %47 = arith.addf %44, %46 : vector<8x1xf32>
      %c0_23 = arith.constant 0 : index
      %c0_24 = arith.constant 0 : index
      %48 = vector.load %arg9[%c0_23, %c0_24] : memref<8x1xf32, #tpu.memory_space<vmem>>, vector<8x1xf32>
      tpu.vector_store %arg9[%c0_23, %c0_24], %47 {strides = array<i32>} : memref<8x1xf32, #tpu.memory_space<vmem>>, vector<8x1xf32>,
      %c0_25 = arith.constant 0 : index
      %c0_26 = arith.constant 0 : index
      %49 = vector.load %arg10[%c0_25, %c0_26] : memref<8x1xf32, #tpu.memory_space<vmem>>, vector<8x1xf32>
      %50 = arith.mulf %14, %7 : vector<8x16xf32>
      %cst_27 = arith.constant dense<0.000000e+00> : vector<8xf32>
      %51 = vector.multi_reduction <add>, %50, %cst_27 [1] : vector<8x16xf32> to vector<8xf32>
      %52 = vector.shape_cast %51 : vector<8xf32> to vector<8x1xf32>
      %53 = arith.addf %49, %52 : vector<8x1xf32>
      %c0_28 = arith.constant 0 : index
      %c0_29 = arith.constant 0 : index
      %54 = vector.load %arg10[%c0_28, %c0_29] : memref<8x1xf32, #tpu.memory_space<vmem>>, vector<8x1xf32>
      tpu.vector_store %arg10[%c0_28, %c0_29], %53 {strides = array<i32>} : memref<8x1xf32, #tpu.memory_space<vmem>>, vector<8x1xf32>,
    } else {
    }
    %c0_16 = arith.constant 0 : index
    %c0_17 = arith.constant 0 : index
    %39 = vector.load %arg8[%c0_16, %c0_17] : memref<8x1xf32, #tpu.memory_space<vmem>>, vector<8x1xf32>
    tpu.vector_store %arg8[%c0_16, %c0_17], %21 {strides = array<i32>} : memref<8x1xf32, #tpu.memory_space<vmem>>, vector<8x1xf32>,
    %c0_i32_18 = arith.constant 0 : i32
    %40 = arith.cmpi eq, %arg1, %c0_i32_18 : i32
    %41 = arith.extui %40 : i1 to i32
    %c0_i32_19 = arith.constant 0 : i32
    %42 = arith.cmpi ne, %41, %c0_i32_19 : i32
    scf.if %42 {
      %c0_20 = arith.constant 0 : index
      %c0_21 = arith.constant 0 : index
      %43 = vector.load %arg10[%c0_20, %c0_21] : memref<8x1xf32, #tpu.memory_space<vmem>>, vector<8x1xf32>
      %c0_22 = arith.constant 0 : index
      %c0_23 = arith.constant 0 : index
      %44 = vector.load %arg6[%c0_22, %c0_23] : memref<8x1xf32, #tpu.memory_space<vmem>>, vector<8x1xf32>
      %45 = arith.divf %43, %44 : vector<8x1xf32>
      %c0_24 = arith.constant 0 : index
      %c0_25 = arith.constant 0 : index
      %46 = vector.load %arg8[%c0_24, %c0_25] : memref<8x1xf32, #tpu.memory_space<vmem>>, vector<8x1xf32>
      %47 = arith.subf %45, %46 : vector<8x1xf32>
      %c0_26 = arith.constant 0 : index
      %c0_27 = arith.constant 0 : index
      %48 = vector.load %arg9[%c0_26, %c0_27] : memref<8x1xf32, #tpu.memory_space<vmem>>, vector<8x1xf32>
      %49 = math.log %48 : vector<8x1xf32>
      %50 = arith.subf %47, %49 : vector<8x1xf32>
      %cst_28 = arith.constant -1.000000e+00 : f32
      %51 = vector.broadcast %cst_28 : f32 to vector<8x1xf32>
      %52 = arith.mulf %51, %50 : vector<8x1xf32>
      %c0_29 = arith.constant 0 : index
      %c0_30 = arith.constant 0 : index
      %53 = vector.load %arg7[%c0_29, %c0_30] : memref<8x1xf32, #tpu.memory_space<vmem>>, vector<8x1xf32>
      tpu.vector_store %arg7[%c0_29, %c0_30], %52 {strides = array<i32>} : memref<8x1xf32, #tpu.memory_space<vmem>>, vector<8x1xf32>,
    } else {
    }
    return
  }
  func.func @transform_0(%arg0: i32, %arg1: i32) -> (i32, i32) {
    %c0_i32 = arith.constant 0 : i32
    %c0_i32_0 = arith.constant 0 : i32
    return %arg0, %c0_i32 : i32, i32
  }
  func.func @transform_1(%arg0: i32, %arg1: i32) -> (i32, i32) {
    %c0_i32 = arith.constant 0 : i32
    %c0_i32_0 = arith.constant 0 : i32
    %c0_i32_1 = arith.constant 0 : i32
    return %c0_i32, %c0_i32_0 : i32, i32
  }
  func.func @transform_2(%arg0: i32, %arg1: i32) -> (i32, i32) {
    %c0_i32 = arith.constant 0 : i32
    %c0_i32_0 = arith.constant 0 : i32
    return %arg0, %c0_i32 : i32, i32
  }
  func.func @transform_3(%arg0: i32, %arg1: i32) -> (i32, i32) {
    %c0_i32 = arith.constant 0 : i32
    %c0_i32_0 = arith.constant 0 : i32
    return %c0_i32, %arg1 : i32, i32
  }
  func.func @transform_4(%arg0: i32, %arg1: i32) -> (i32, i32) {
    %c0_i32 = arith.constant 0 : i32
    %c0_i32_0 = arith.constant 0 : i32
    return %arg0, %c0_i32 : i32, i32
  }
  func.func @transform_5(%arg0: i32, %arg1: i32) -> (i32, i32) {
    %c0_i32 = arith.constant 0 : i32
    %c0_i32_0 = arith.constant 0 : i32
    return %arg0, %c0_i32 : i32, i32
  }
}

</mosaic_0001>

<bundles_post_ra>
// kernel: tpu_custom_call.1
= control target key start
LH: loop header
LB: loop body
LE: loop exit
PB: predicated region body
PF: predicated region fallthrough
CT: control target
= control target key end

     0   :  { %s698_s18 = smov 0   ;;  %s700_s19 = smov 0   ;;  %s792_s0 = inlined_call_operand.vmem [shape: f32[16,32], index: 0, kind: input, shape index: {}]   ;;  %s793_s1 = inlined_call_operand.vmem [shape: f32[16,32], index: 1, kind: input, shape index: {}]   ;;  %s794_s2 = inlined_call_operand.vmem [shape: s32[16,1], index: 2, kind: input, shape index: {}]   ;;  %s795_s3 = inlined_call_operand.vmem [shape: s32[1,16], index: 3, kind: input, shape index: {}]   ;;  %s796_s4 = inlined_call_operand.vmem [shape: f32[16,1], index: 4, kind: input, shape index: {}]   ;;  %s797_s5 = inlined_call_operand.vmem [shape: f32[16,1], index: 5, kind: output, shape index: {}]  }
   0x1   :  { %s702_s20 = smov 0  }
   0x2 LB: > { %s27_s21 = sadd.s32 1, %s658_s19  ;;  %p578_p0 = scmp.ge.s32.totalorder %s662_s20, 1  ;;  %s662_s20 = sphi %s702_s20, %s15_s20   ;;  %s658_s19 = sphi %s700_s19, %s800_s19   ;;  %s654_s18 = sphi %s698_s18, %s799_s18  }
   0x3   : > { %p29_p1 = scmp.ge.s32.totalorder %s27_s21, 2  ;;  %p224_p2 = scmp.lt.s32.totalorder %s662_s20, 3 }
   0x5   : > { %s802_s21 = smov (%p29_p1, %s27_s21), 0  ;;  %p225_p3 = pnand %p578_p0, %p224_p2 }
   0x6   : > { %p261_p4 = scmp.lt.s32.totalorder (!%p225_p3), %s654_s18, 1  ;;  %s588_s15 = sshll.u32 (!%p225_p3), %s654_s18, 3 }
   0x7   : > { %228 = sbr.rel (%p225_p3) target bundleno = 823 (0x337), region = 40  ;;  %s406_s16 = sadd.s32 (!%p225_p3), 8, %s588_s15 }
   0x8   : > { %p405_p5 = scmp.lt.s32.totalorder (!%p225_p3), %s588_s15, 16  ;;  %p589_p6 = scmp.gt.s32.totalorder (!%p225_p3), %s406_s16, 0 }
   0xa   : > { %p755_p7 = pnand (!%p225_p3), %p589_p6, %p405_p5 }
   0xc   : > { %vm382_vm0 = vcmask 7168   ;;  %v283_v0 = vld [vmem:[%s793_s1 + $0x8] sm:$0xff]  ;;  %vm285_vm1 = vcmask 261120   ;;  %v664_v1 = vmov 0.0   ;;  %v665_v2 = vmov -inf   ;;  %v282_v3 = vld [vmem:[%s793_s1] sm:$0xff] }
   0xd   : > { %595 = vmatprep.subr.mxu0 %v664_v1  ;;  %383 = vst.msk [vmem:[#allocation2] sm:$0xff] %vm382_vm0, %v665_v2  ;;  %384 = vst.msk [vmem:[#allocation3] sm:$0xff] %vm382_vm0, %v664_v1  ;;  %vm666_vm2 = vmmov 0   ;;  %s262_s26 = scalar_select %p261_p4, %s654_s18, 1  ;;  %vm387_vm3 = vcmask 130048   ;;  %v667_v9 = vmov 0  }
   0xe   : > { %385 = vst.msk [vmem:[#allocation4] sm:$0xff] %vm382_vm0, %v664_v1  ;;  %596 = vmatpush3.xpose.msk.msra.mxu0 %vm285_vm1, %v283_v0  ;;  %599 = vmatprep.mubr.msk.f32.mxu0 %vm666_vm2, %v664_v1  ;;  %v586_v14 = vld [vmem:[%s795_s3] ss:$0 sm:$0xff] }
   0xf   : > { %597 = vmatprep.subr.mxu0 %v664_v1  ;;  %s730_s27 = sshll.u32 %s262_s26, 3  ;;  %630 = vset.pattern.permute.xlu0 %v667_v9 }
  0x10   : > { %s264_s30 = scalar_lea.vmem %s792_s0, %s730_s27  ;;  %s275_s8 = scalar_lea.vmem %s796_s4, %s730_s27  ;;  %631 = vset.pattern.permute.xlu1 %v667_v9 }
  0x11   : > { %s279_s11 = scalar_lea.vmem %s797_s5, %s730_s27  ;;  %v284_v4 = vld [vmem:[%s264_s30] sm:$0xff]  ;;  %s268_s14 = scalar_lea.vmem %s794_s2, %s730_s27 }
  0x12   : > { %598 = vmatpush3.xpose.msk.msra.mxu0 %vm285_vm1, %v282_v3  ;;  %v366_v10 = vld [vmem:[%s268_s14] sm:$0xff] }
  0x13   : > { %369 = vperm.xlu1 %631, %v366_v10  }
  0x14   : > { %v386_v11 = vld [vmem:[#allocation2] sm:$0xff] }
  0x15   : > { %600 = vmatmul.mubr.msk.f32.vlgmr.msra.gmra.mxu0 %vm285_vm1, %v284_v4 }
  0x8e   : > { %v370_v15 = vpop.permute.xlu1 %369 }
  0x8f   : > { %vm375_vm4 = vcmp.eq.s32.totalorder %v370_v15, %v586_v14 }
  0x90   : > { %v587_v17 = vsel %vm375_vm4, 1.0, %v664_v1 }
  0xd5   : > { %v361_v5 = vpop.f32.mrf.mxu0 }
  0xd6   : > { %v365_v6 = vmul.f32 14.285714, %v361_v5 }
  0xd7   : > { %v601_v7 = vpop.f32.mrf.mxu0 }
  0xd8   : > { %v388_v8 = vsel %vm387_vm3, %v365_v6, -inf }
  0xd9   : > { %389 = vmax.xlane.f32.xlu0 %v388_v8 }
 0x162   : > { %v390_v12 = vpop.xlane.xlu0 %389 }
 0x163   : > { %v391_v13 = vmax.f32 %v386_v11, %v390_v12 }
 0x165   : > { %v392_v16 = vsub.f32 %v386_v11, %v391_v13  ;;  %397 = vperm.xlu0 %630, %v391_v13  }
 0x167   : > { %v393_v18 = vmul.f32 1.442695, %v392_v16 }
 0x169   : > { %632 = vpow2.f32 %v393_v18 }
 0x176   : > { %v633_v19 = vpop.eup %632 }
 0x1e0   : > { %v398_v20 = vpop.permute.xlu0 %397 }
 0x1e1   : > { %v400_v21 = vsub.f32 %v365_v6, %v398_v20 }
 0x1e3   : > { %v401_v22 = vmul.f32 1.442695, %v400_v21 }
 0x1e5   : > { %634 = vpow2.f32 %v401_v22 }
 0x1ee   : > { %411 = sbr.rel (%p755_p7) target bundleno = 653 (0x28d), region = 48 }
 0x1f2   : > { %v635_v23 = vpop.eup %634 }
 0x1f3   : > { %v412_v24 = vlaneseq  ;;  %v414_v25 = vstv %s588_s15  ;;  %v421_v34 = vld [vmem:[#allocation3] sm:$0xff]  ;;  %v430_v38 = vld [vmem:[#allocation4] sm:$0xff] }
 0x1f4   : > { %v422_v35 = vmul.f32 %v633_v19, %v421_v34 }
 0x1f5   : > { %v413_v26 = vshrl.u32 %v412_v24, 7  ;;  %v417_v27 = vand.u32 127, %v412_v24 }
 0x1f7   : > { %v415_v28 = vadd.s32 %v414_v25, %v413_v26 }
 0x1f9   : > { %vm420_vm5 = vcmp.ne.s32.totalorder %v415_v28, %v417_v27 }
 0x1fa   : > { %v423_v29 = vsel %vm420_vm5, %v635_v23, 0.0  ;;  %v431_v30 = vsel %vm420_vm5, %v587_v17, 0.0 }
 0x1fb   : > { %v424_v31 = vsel %vm387_vm3, %v423_v29, 0.0  ;;  %v432_v32 = vmul.f32 %v431_v30, %v365_v6 }
 0x1fc   : > { %425 = vadd.xlane.f32.xlu0 %v424_v31 }
 0x1fd   : > { %v433_v33 = vsel %vm387_vm3, %v432_v32, 0.0 }
 0x200   : > { %434 = vadd.xlane.f32.xlu0 %v433_v33 }
 0x285   : > { %v426_v36 = vpop.xlane.xlu0 %425 }
 0x286   : > { %v427_v37 = vadd.f32 %v426_v36, %v422_v35 }
 0x288   : > { %429 = vst.msk [vmem:[#allocation3] sm:$0xff] %vm382_vm0, %v427_v37 }
 0x289   : > { %v435_v39 = vpop.xlane.xlu0 %434 }
 0x28a   : > { %v436_v40 = vadd.f32 %v435_v39, %v430_v38 }
 0x28c   : > { %437 = vst.msk [vmem:[#allocation4] sm:$0xff] %vm382_vm0, %v436_v40 }
 0x28d PF: > { %440 = sbr.rel (!%p755_p7) target bundleno = 799 (0x31f), region = 52  ;;  %v443_v41 = vsel (%p755_p7), %vm387_vm3, %v635_v23, 0.0  ;;  %v450_v42 = vmul.f32 (%p755_p7), %v587_v17, %v365_v6 }
 0x28e   : > { %444 = vadd.xlane.f32.xlu0 (%p755_p7), %v443_v41 }
 0x28f   : > { %v451_v43 = vsel (%p755_p7), %vm387_vm3, %v450_v42, 0.0  ;;  %v441_v44 = vld [vmem:[#allocation3] sm:$0xff] (%p755_p7) }
 0x290   : > { %v442_v45 = vmul.f32 (%p755_p7), %v633_v19, %v441_v44 }
 0x292   : > { %452 = vadd.xlane.f32.xlu0 %v451_v43 }
 0x293   : > { %v449_v48 = vld [vmem:[#allocation4] sm:$0xff] }
 0x317   : > { %v445_v46 = vpop.xlane.xlu0 %444 }
 0x318   : > { %v446_v47 = vadd.f32 %v445_v46, %v442_v45 }
 0x31a   : > { %448 = vst.msk [vmem:[#allocation3] sm:$0xff] %vm382_vm0, %v446_v47 }
 0x31b   : > { %v453_v49 = vpop.xlane.xlu0 %452 }
 0x31c   : > { %v454_v50 = vadd.f32 %v453_v49, %v449_v48 }
 0x31e   : > { %455 = vst.msk [vmem:[#allocation4] sm:$0xff] %vm382_vm0, %v454_v50 }
 0x31f PF: > { %457 = vst.msk [vmem:[#allocation2] sm:$0xff] %vm382_vm0, %v391_v13  ;;  %v462_v51 = vld [vmem:[%s275_s8] sm:$0xff] }
 0x320   : > { %636 = vrcp.f32 %v462_v51 }
 0x321   : > { %v467_v52 = vld [vmem:[#allocation3] sm:$0xff] }
 0x322   : > { %638 = vlog2.f32 %v467_v52 }
 0x325   : > { %v461_v53 = vld [vmem:[#allocation4] sm:$0xff] }
 0x326   : > { %v465_v55 = vld [vmem:[#allocation2] sm:$0xff] }
 0x32d   : > { %v637_v54 = vpop.eup %636 }
 0x32e   : > { %v464_v57 = vmul.f32 %v637_v54, %v461_v53 }
 0x32f   : > { %v639_v56 = vpop.eup %638 }
 0x330   : > { %v469_v58 = vmul.f32 0.6931472, %v639_v56  ;;  %v466_v59 = vsub.f32 %v464_v57, %v465_v55 }
 0x332   : > { %v470_v60 = vsub.f32 %v466_v59, %v469_v58 }
 0x334   : > { %v471_v61 = vmul.f32 -1.0, %v470_v60 }
 0x336   : > { %472 = vst.msk [vmem:[%s279_s11] sm:$0xff] %vm382_vm0, %v471_v61 }
 0x337 PF: > { %s15_s20 = sadd.s32 1, %s662_s20   ;;  %s799_s18 = smov %s658_s19 }
 0x338   : > { %p12_p8 = scmp.ge.s32.totalorder %s15_s20, 4   ;;  %s800_s19 = smov %s802_s21 }
 0x33a   :  { %14 = sbr.rel (!%p12_p8) target bundleno = 2 (0x2), region = 96 }

</bundles_post_ra>
